<compile_context>
chip_gen: v7x
topology: tpu7x:2x2x1
jax: 0.10.0
libtpu: 0.0.40
codegen_flags: <defaults>
</compile_context>

<pallas_src>
import functools

import jax
import jax.numpy as jnp
from jax.experimental import pallas as pl
from jax.experimental.pallas import tpu as pltpu


VMEM_LIMIT = 32 * 1024 * 1024          # safe on v5e/v6e/v7x (raises v5e's 16 MiB default)
CLS_PAD = 128                          # pad 5-class head to a full lane for dense stores

# Small-but-faithful config: hidden must be 768 (forced by nn.Linear(768, 5)),
# 12 heads like bert-base; depth/vocab/seq kept small for this synthetic run.
CFG = dict(vocab=1000, hidden=768, heads=12, layers=2, inter=3072,
           max_pos=64, type_vocab=2, num_classes=5)


def _tile(dim, desired, align):
    """Largest multiple of `align` <= desired that evenly divides dim, else full dim."""
    t = (min(desired, dim) // align) * align
    while t >= align:
        if dim % t == 0:
            return t
        t -= align
    return dim


def _gelu_tanh(x):
    # TODO(synk): HF BERT uses exact erf-GELU; tanh approximation maps onto the EUP.
    c = 0.7978845608028654  # sqrt(2/pi)
    return 0.5 * x * (1.0 + jnp.tanh(c * (x + 0.044715 * x * x * x)))


def _layernorm_rows(h, g, b, eps):
    mu = jnp.mean(h, axis=-1, keepdims=True)
    hc = h - mu
    var = jnp.mean(hc * hc, axis=-1, keepdims=True)
    return (hc * jax.lax.rsqrt(var + eps)) * g + b


# ----------------------------------------------------------------------------
# Pallas kernels
# ----------------------------------------------------------------------------

def _layernorm_kernel(x_ref, g_ref, b_ref, o_ref, *, eps):
    x = x_ref[...].astype(jnp.float32)
    o_ref[...] = _layernorm_rows(x, g_ref[...], b_ref[...], eps).astype(o_ref.dtype)


def layernorm(x, g, b, eps=1e-12):
    """Row-wise LayerNorm; x:(M,H) bf16 -> (M,H) bf16. Tiled over M (>=2 parallel steps)."""
    M, H = x.shape
    tm = _tile(M, max(8, M // 2), 8)
    return pl.pallas_call(
        functools.partial(_layernorm_kernel, eps=eps),
        out_shape=jax.ShapeDtypeStruct((M, H), jnp.bfloat16),
        grid_spec=pltpu.PrefetchScalarGridSpec(
            num_scalar_prefetch=0,
            grid=(M // tm,),
            in_specs=[
                pl.BlockSpec((tm, H), lambda i: (i, 0)),
                pl.BlockSpec((1, H), lambda i: (0, 0)),
                pl.BlockSpec((1, H), lambda i: (0, 0)),
            ],
            out_specs=pl.BlockSpec((tm, H), lambda i: (i, 0)),
        ),
        compiler_params=pltpu.CompilerParams(
            dimension_semantics=("parallel",),
            vmem_limit_bytes=VMEM_LIMIT),
    )(x, g.reshape(1, H), b.reshape(1, H))


def _attn_block_kernel(x_ref, wqkv_ref, bqkv_ref, bias_ref, wo_ref, bo_ref,
                       g_ref, lb_ref, o_ref, *, nH, eps):
    """Fused: QKV proj -> per-head attention -> output proj -> +residual -> LayerNorm.

    One grid step handles all heads of one batch element; all tensors stay
    lane-dense (q/k/v are sliced out of the (S, 3H) qkv slab per head).
    """
    x = x_ref[...]                                               # (S, H) bf16
    S, H = x.shape
    Dh = H // nH

    qkv = jnp.dot(x, wqkv_ref[...], preferred_element_type=jnp.float32)
    qkv = (qkv + bqkv_ref[...]).astype(jnp.bfloat16)             # (S, 3H)
    bias = bias_ref[0]                                           # (1, S) f32 additive mask

    # bias + residual, then fold the output projection per head.
    acc = bo_ref[...] + x.astype(jnp.float32)                    # (S, H) f32
    for h in range(nH):                                          # unrolled, static slices
        q_h = qkv[:, h * Dh:(h + 1) * Dh]                        # (S, Dh)  1/sqrt(Dh) folded in
        k_h = qkv[:, H + h * Dh:H + (h + 1) * Dh]
        v_h = qkv[:, 2 * H + h * Dh:2 * H + (h + 1) * Dh]
        s = jax.lax.dot_general(q_h, k_h, (((1,), (1,)), ((), ())),
                                preferred_element_type=jnp.float32)   # (S, S)
        s = s + bias
        m = jnp.max(s, axis=-1, keepdims=True)
        p = jnp.exp(s - m)
        p = p * pl.reciprocal(jnp.sum(p, axis=-1, keepdims=True), approx=True)
        ctx_h = jnp.dot(p.astype(v_h.dtype), v_h,
                        preferred_element_type=jnp.float32)           # (S, Dh)
        acc += jnp.dot(ctx_h.astype(wo_ref.dtype),
                       wo_ref[h * Dh:(h + 1) * Dh, :],
                       preferred_element_type=jnp.float32)            # (S, H)

    o_ref[...] = _layernorm_rows(acc, g_ref[...], lb_ref[...], eps).astype(o_ref.dtype)


def attention_block(x, bias, layer, *, B, S, nH, eps=1e-12):
    """x:(B*S,H) bf16, bias:(B,1,S) f32 -> LayerNorm(AttnOut(Attention(QKV(x))) + x)."""
    M, H = x.shape
    assert M == B * S
    return pl.pallas_call(
        functools.partial(_attn_block_kernel, nH=nH, eps=eps),
        out_shape=jax.ShapeDtypeStruct((M, H), jnp.bfloat16),
        grid_spec=pltpu.PrefetchScalarGridSpec(
            num_scalar_prefetch=0,
            grid=(B,),
            in_specs=[
                pl.BlockSpec((S, H), lambda b: (b, 0)),          # rows of batch b
                pl.BlockSpec((H, 3 * H), lambda b: (0, 0)),      # fused Wqkv
                pl.BlockSpec((1, 3 * H), lambda b: (0, 0)),
                pl.BlockSpec((1, 1, S), lambda b: (b, 0, 0)),    # additive mask
                pl.BlockSpec((H, H), lambda b: (0, 0)),          # Wo
                pl.BlockSpec((1, H), lambda b: (0, 0)),
                pl.BlockSpec((1, H), lambda b: (0, 0)),
                pl.BlockSpec((1, H), lambda b: (0, 0)),
            ],
            out_specs=pl.BlockSpec((S, H), lambda b: (b, 0)),
        ),
        compiler_params=pltpu.CompilerParams(
            dimension_semantics=("parallel",),
            vmem_limit_bytes=VMEM_LIMIT),
    )(x, layer["qkv_w"], layer["qkv_b"].reshape(1, 3 * H), bias,
      layer["ao_w"], layer["ao_b"].reshape(1, H),
      layer["ao_ln_g"].reshape(1, H), layer["ao_ln_b"].reshape(1, H))


def _ffn_block_kernel(x_ref, wi_ref, bi_ref, wo_ref, bo_ref, g_ref, lb_ref,
                      o_ref, *, eps):
    """Fused FFN: LayerNorm(GELU(x @ Wi + bi) @ Wo + bo + x)."""
    x = x_ref[...]                                               # (tm, H) bf16
    h = jnp.dot(x, wi_ref[...], preferred_element_type=jnp.float32) + bi_ref[...]
    h = _gelu_tanh(h).astype(jnp.bfloat16)                       # (tm, I)
    y = jnp.dot(h, wo_ref[...], preferred_element_type=jnp.float32)
    y = y + bo_ref[...] + x.astype(jnp.float32)
    o_ref[...] = _layernorm_rows(y, g_ref[...], lb_ref[...], eps).astype(o_ref.dtype)


def ffn_block(x, layer, eps=1e-12):
    M, H = x.shape
    I = layer["i_w"].shape[1]
    tm = _tile(M, max(8, M // 2), 8)                             # >=2 parallel steps
    return pl.pallas_call(
        functools.partial(_ffn_block_kernel, eps=eps),
        out_shape=jax.ShapeDtypeStruct((M, H), jnp.bfloat16),
        grid_spec=pltpu.PrefetchScalarGridSpec(
            num_scalar_prefetch=0,
            grid=(M // tm,),
            in_specs=[
                pl.BlockSpec((tm, H), lambda i: (i, 0)),
                pl.BlockSpec((H, I), lambda i: (0, 0)),
                pl.BlockSpec((1, I), lambda i: (0, 0)),
                pl.BlockSpec((I, H), lambda i: (0, 0)),
                pl.BlockSpec((1, H), lambda i: (0, 0)),
                pl.BlockSpec((1, H), lambda i: (0, 0)),
                pl.BlockSpec((1, H), lambda i: (0, 0)),
            ],
            out_specs=pl.BlockSpec((tm, H), lambda i: (i, 0)),
        ),
        compiler_params=pltpu.CompilerParams(
            dimension_semantics=("parallel",),
            vmem_limit_bytes=VMEM_LIMIT),
    )(x, layer["i_w"], layer["i_b"].reshape(1, I),
      layer["o_w"], layer["o_b"].reshape(1, H),
      layer["o_ln_g"].reshape(1, H), layer["o_ln_b"].reshape(1, H))


def _pooler_cls_kernel(x_ref, pw_ref, pb_ref, cw_ref, cb_ref, o_ref):
    pooled = jnp.dot(x_ref[...], pw_ref[...],
                     preferred_element_type=jnp.float32) + pb_ref[...]
    pooled = jnp.tanh(pooled)
    logits = jnp.dot(pooled.astype(cw_ref.dtype), cw_ref[...],
                     preferred_element_type=jnp.float32) + cb_ref[...]
    o_ref[...] = logits


def pooler_classifier(cls_tok, pw, pb, cw_pad, cb_pad):
    """tanh(cls @ pw + pb) @ cw_pad + cb_pad. Rows pre-padded to 8, output (R, CLS_PAD) f32."""
    R, H = cls_tok.shape
    Np = cw_pad.shape[1]
    return pl.pallas_call(
        _pooler_cls_kernel,
        out_shape=jax.ShapeDtypeStruct((R, Np), jnp.float32),
        grid_spec=pltpu.PrefetchScalarGridSpec(
            num_scalar_prefetch=0,
            grid=(1,),
            in_specs=[
                pl.BlockSpec((R, H), lambda i: (0, 0)),
                pl.BlockSpec((H, H), lambda i: (0, 0)),
                pl.BlockSpec((1, H), lambda i: (0, 0)),
                pl.BlockSpec((H, Np), lambda i: (0, 0)),
                pl.BlockSpec((1, Np), lambda i: (0, 0)),
            ],
            out_specs=pl.BlockSpec((R, Np), lambda i: (0, 0)),
        ),
        compiler_params=pltpu.CompilerParams(
            dimension_semantics=("arbitrary",),
            vmem_limit_bytes=VMEM_LIMIT),
    )(cls_tok, pw, pb.reshape(1, H), cw_pad, cb_pad.reshape(1, Np))


# ----------------------------------------------------------------------------
# Model (glue in plain JAX, compute in the kernels above)
# ----------------------------------------------------------------------------

def init_params(key, cfg=CFG):
    H, I, nH = cfg["hidden"], cfg["inter"], cfg["heads"]
    Dh = H // nH
    ks = iter(jax.random.split(key, 8 + 8 * cfg["layers"]))
    bf16 = jnp.bfloat16

    def w(shape, scale=0.02):
        return (scale * jax.random.normal(next(ks), shape)).astype(jnp.float32)

    def zeros(shape):
        return jnp.zeros(shape, jnp.float32)

    def ones(shape):
        return jnp.ones(shape, jnp.float32)

    attn_scale = 1.0 / (Dh ** 0.5)

    params = {
        "embeddings": {
            "word": w((cfg["vocab"], H)),
            "pos": w((cfg["max_pos"], H)),
            "type": w((cfg["type_vocab"], H)),
            "ln_g": ones((H,)), "ln_b": zeros((H,)),
        },
        "layers": [],
        "pooler_w": w((H, H)).astype(bf16), "pooler_b": zeros((H,)),
    }
    cls_w = w((H, cfg["num_classes"]))
    cls_b = zeros((cfg["num_classes"],))
    pad_n = CLS_PAD - cfg["num_classes"]
    params["cls_w_pad"] = jnp.pad(cls_w, ((0, 0), (0, pad_n))).astype(bf16)
    params["cls_b_pad"] = jnp.pad(cls_b, (0, pad_n))

    for _ in range(cfg["layers"]):
        q_w, k_w, v_w = w((H, H)), w((H, H)), w((H, H))
        q_b, k_b, v_b = zeros((H,)), zeros((H,)), zeros((H,))
        params["layers"].append({
            # Fused QKV projection; 1/sqrt(Dh) folded into the query weights/bias.
            "qkv_w": jnp.concatenate([q_w * attn_scale, k_w, v_w], axis=1).astype(bf16),
            "qkv_b": jnp.concatenate([q_b * attn_scale, k_b, v_b], axis=0),
            "ao_w": w((H, H)).astype(bf16), "ao_b": zeros((H,)),
            "ao_ln_g": ones((H,)), "ao_ln_b": zeros((H,)),
            "i_w": w((H, I)).astype(bf16), "i_b": zeros((I,)),
            "o_w": w((I, H)).astype(bf16), "o_b": zeros((H,)),
            "o_ln_g": ones((H,)), "o_ln_b": zeros((H,)),
        })
    return params


def bert_classifier_forward(params, ids, mask, token_type_ids, cfg=CFG):
    B, S = ids.shape
    H, nH = cfg["hidden"], cfg["heads"]

    emb = params["embeddings"]
    x = (jnp.take(emb["word"], ids, axis=0)
         + emb["pos"][None, :S, :]
         + jnp.take(emb["type"], token_type_ids, axis=0))           # (B, S, H) f32
    # cast to bf16 before the LN kernel (halves its input DMA bytes)
    x = layernorm(x.reshape(B * S, H).astype(jnp.bfloat16),
                  emb["ln_g"], emb["ln_b"])                          # (B*S, H) bf16
    # embedding dropout (p=0.1): identity at inference.

    # HF-style extended attention mask: (1 - mask) * -10000, broadcast over heads/queries.
    bias = ((1.0 - mask.astype(jnp.float32)) * -10000.0).reshape(B, 1, S)

    for layer in params["layers"]:
        x = attention_block(x, bias, layer, B=B, S=S, nH=nH)         # fused attn half-layer
        x = ffn_block(x, layer)                                      # fused FFN half-layer

    cls_tok = x.reshape(B, S, H)[:, 0, :]                            # (B, H) bf16
    # l2 = nn.Dropout(0.3)
    # TODO(synk): training-mode dropout (p=0.3) omitted; eval-mode identity used.
    rows = ((B + 7) // 8) * 8                                        # sublane-dense rows
    cls_pad = jnp.pad(cls_tok, ((0, rows - B), (0, 0)))
    logits_pad = pooler_classifier(cls_pad, params["pooler_w"], params["pooler_b"],
                                   params["cls_w_pad"], params["cls_b_pad"])
    return logits_pad[:B, :cfg["num_classes"]]                       # (B, 5) f32


# ----------------------------------------------------------------------------
# Main
# ----------------------------------------------------------------------------

if __name__ == "__main__":
    key = jax.random.PRNGKey(0)
    k_params, k_ids, k_tt = jax.random.split(key, 3)

    B, S = 2, 16
    params = init_params(k_params)

    ids = jax.random.randint(k_ids, (B, S), 0, CFG["vocab"], dtype=jnp.int32)
    # second sequence is shorter (last 4 positions padded / masked out)
    mask = (jnp.arange(S)[None, :] < jnp.array([[S], [S - 4]])).astype(jnp.int32)
    token_type_ids = jax.random.randint(k_tt, (B, S), 0, CFG["type_vocab"],
                                        dtype=jnp.int32)

    logits = bert_classifier_forward(params, ids, mask, token_type_ids)
    logits = jax.block_until_ready(logits)
    assert logits.shape == (B, CFG["num_classes"])
    assert bool(jnp.all(jnp.isfinite(logits)))
    print("KERNEL_OK")
</pallas_src>

<mosaic_0001>
module attributes {stable_mosaic.version = 11 : i64} {
  func.func @_layernorm_kernel(%arg0: i32, %arg1: memref<16x768xbf16, #tpu.memory_space<vmem>>, %arg2: memref<1x768xf32, #tpu.memory_space<vmem>>, %arg3: memref<1x768xf32, #tpu.memory_space<vmem>>, %arg4: memref<16x768xbf16, #tpu.memory_space<vmem>>) attributes {dimension_semantics = [#tpu.dimension_semantics<parallel>], iteration_bounds = array<i64: 2>, scalar_prefetch = 0 : i64, scratch_operands = 0 : i64, tpu.core_type = #tpu.core_type<tc>, window_params = [{transform_indices = @transform_0, window_bounds = array<i64: 16, 768>}, {pipeline_mode = #tpu.pipeline_mode<synchronous>, transform_indices = @transform_1, window_bounds = array<i64: 1, 768>}, {pipeline_mode = #tpu.pipeline_mode<synchronous>, transform_indices = @transform_2, window_bounds = array<i64: 1, 768>}, {transform_indices = @transform_3, window_bounds = array<i64: 16, 768>}]} {
    %c0 = arith.constant 0 : index
    %c0_0 = arith.constant 0 : index
    %0 = vector.load %arg1[%c0, %c0_0] : memref<16x768xbf16, #tpu.memory_space<vmem>>, vector<16x768xbf16>
    %1 = arith.extf %0 : vector<16x768xbf16> to vector<16x768xf32>
    %c0_1 = arith.constant 0 : index
    %c0_2 = arith.constant 0 : index
    %2 = vector.load %arg2[%c0_1, %c0_2] : memref<1x768xf32, #tpu.memory_space<vmem>>, vector<1x768xf32>
    %c0_3 = arith.constant 0 : index
    %c0_4 = arith.constant 0 : index
    %3 = vector.load %arg3[%c0_3, %c0_4] : memref<1x768xf32, #tpu.memory_space<vmem>>, vector<1x768xf32>
    %cst = arith.constant dense<0.000000e+00> : vector<16xf32>
    %4 = vector.multi_reduction <add>, %1, %cst [1] : vector<16x768xf32> to vector<16xf32>
    %5 = vector.shape_cast %4 : vector<16xf32> to vector<16x1xf32>
    %cst_5 = arith.constant 7.680000e+02 : f32
    %6 = vector.broadcast %cst_5 : f32 to vector<16x1xf32>
    %7 = arith.divf %5, %6 : vector<16x1xf32>
    %8 = vector.broadcast %7 : vector<16x1xf32> to vector<16x768xf32>
    %9 = arith.subf %1, %8 : vector<16x768xf32>
    %10 = arith.mulf %9, %9 : vector<16x768xf32>
    %cst_6 = arith.constant dense<0.000000e+00> : vector<16xf32>
    %11 = vector.multi_reduction <add>, %10, %cst_6 [1] : vector<16x768xf32> to vector<16xf32>
    %12 = vector.shape_cast %11 : vector<16xf32> to vector<16x1xf32>
    %cst_7 = arith.constant 7.680000e+02 : f32
    %13 = vector.broadcast %cst_7 : f32 to vector<16x1xf32>
    %14 = arith.divf %12, %13 : vector<16x1xf32>
    %cst_8 = arith.constant 9.99999996E-13 : f32
    %15 = vector.broadcast %cst_8 : f32 to vector<16x1xf32>
    %16 = arith.addf %14, %15 : vector<16x1xf32>
    %17 = math.rsqrt %16 : vector<16x1xf32>
    %18 = vector.broadcast %17 : vector<16x1xf32> to vector<16x768xf32>
    %19 = arith.mulf %9, %18 : vector<16x768xf32>
    %20 = vector.broadcast %2 : vector<1x768xf32> to vector<16x768xf32>
    %21 = arith.mulf %19, %20 : vector<16x768xf32>
    %22 = vector.broadcast %3 : vector<1x768xf32> to vector<16x768xf32>
    %23 = arith.addf %21, %22 : vector<16x768xf32>
    %24 = arith.truncf %23 : vector<16x768xf32> to vector<16x768xbf16>
    %c0_9 = arith.constant 0 : index
    %c0_10 = arith.constant 0 : index
    %25 = vector.load %arg4[%c0_9, %c0_10] : memref<16x768xbf16, #tpu.memory_space<vmem>>, vector<16x768xbf16>
    tpu.vector_store %arg4[%c0_9, %c0_10], %24 {strides = array<i32>} : memref<16x768xbf16, #tpu.memory_space<vmem>>, vector<16x768xbf16>,
    return
  }
  func.func @transform_0(%arg0: i32) -> (i32, i32) {
    %c0_i32 = arith.constant 0 : i32
    %c0_i32_0 = arith.constant 0 : i32
    return %arg0, %c0_i32 : i32, i32
  }
  func.func @transform_1(%arg0: i32) -> (i32, i32) {
    %c0_i32 = arith.constant 0 : i32
    %c0_i32_0 = arith.constant 0 : i32
    %c0_i32_1 = arith.constant 0 : i32
    return %c0_i32, %c0_i32_0 : i32, i32
  }
  func.func @transform_2(%arg0: i32) -> (i32, i32) {
    %c0_i32 = arith.constant 0 : i32
    %c0_i32_0 = arith.constant 0 : i32
    %c0_i32_1 = arith.constant 0 : i32
    return %c0_i32, %c0_i32_0 : i32, i32
  }
  func.func @transform_3(%arg0: i32) -> (i32, i32) {
    %c0_i32 = arith.constant 0 : i32
    %c0_i32_0 = arith.constant 0 : i32
    return %arg0, %c0_i32 : i32, i32
  }
}

</mosaic_0001>

<bundles_post_ra>
// kernel: tpu_custom_call.1
= control target key start
LH: loop header
LB: loop body
LE: loop exit
PB: predicated region body
PF: predicated region fallthrough
CT: control target
= control target key end

     0   :  { %8 = vsyncpa [#allocation3], 0  ;;  %s1026_s0 = inlined_call_operand.hbm [shape: bf16[32,768], index: 0, kind: input, shape index: {}]   ;;  %s1027_s1 = inlined_call_operand.hbm [shape: f32[1,768], index: 1, kind: input, shape index: {}]   ;;  %s1028_s2 = inlined_call_operand.vmem [shape: f32[1,768], index: 2, kind: input, shape index: {}]   ;;  %s1029_s3 = inlined_call_operand.hbm [shape: bf16[32,768], index: 3, kind: output, shape index: {}]  }
   0x1   :  { %10 = vsyncpa [#allocation3 + $0x1], 0 }
   0x2   :  { %11 = vsyncpa [#allocation6], 0 }
   0x3   :  { %12 = vsyncpa [#allocation4], 0 }
   0x4   :  { %14 = vsyncpa [#allocation4 + $0x1], 0  ;;  %s776_s12 = smov 0   ;;  %s778_s13 = smov 0  }
   0x5   :  { %s780_s14 = smov 0   ;;  %s782_s15 = smov 0  }
   0x6 LB: > { %s797_s16 = sadd.s32 4294967295, %s747_s15   ;;  %s524_s17 = sadd.s32 4294967294, %s747_s15   ;;  %s747_s15 = sphi %s782_s15, %s1054_s15   ;;  %s743_s14 = sphi %s780_s14, %s1053_s14   ;;  %s739_s13 = sphi %s778_s13, %s1052_s13   ;;  %s735_s12 = sphi %s776_s12, %s1051_s12  }
   0x7   : > { %s801_s18 = sadd.s32 1, %s747_s15   ;;  %s27_s19 = sadd.s32 1, %s743_s14 }
   0x8   : > { %s24_s20 = ssub.s32 %s747_s15, %s801_s18  ;;  %p34_p0 = scmp.ne.s32.totalorder %s743_s14, %s739_s13 }
   0x9   : > { %p25_p1 = scmp.eq.s32.totalorder %s24_s20, 0  ;;  %p35_p2 = scmp.eq.s32.totalorder %s747_s15, 0 }
   0xa   : > { %p40_p3 = scmp.ne.s32.totalorder %s739_s13, %s735_s12  ;;  %p1030_p4 = scmp.eq.s32.totalorder %s797_s16, 0 }
   0xb   : > { %s813_s21 = scalar_select %p25_p1, %s743_s14, %s27_s19  }
   0xc   : > { %p815_p5 = por %p35_p2, %p34_p0  ;;  %p821_p6 = por %p1030_p4, %p40_p3 }
   0xd   : > { %p106_p7 = scmp.eq.s32.totalorder %s797_s16, 1  ;;  %p112_p8 = scmp.eq.s32.totalorder %s524_s17, 1 }
   0xe   : > { %s1036_s23 = scalar_select %p821_p6, 1, 0 }
   0xf   : > { %p525_p9 = scmp.ge.s32.totalorder %s747_s15, 1  ;;  %p119_p10 = scmp.lt.s32.totalorder %s747_s15, 3 }
  0x10   : > { %p828_p11 = por %p106_p7, %p34_p0  ;;  %p832_p12 = por %p112_p8, %p40_p3 }
  0x11   : > { %p836_p13 = pnand %p525_p9, %p119_p10  ;;  %s749_s27 = smov [#allocation5]  }
  0x12   : > { %s1037_s24 = scalar_select %p828_p11, 1, 0 }
  0x13   : > { %s1038_s25 = scalar_select %p832_p12, 1, 0 }
  0x14   : > { %s1039_s26 = scalar_select %p836_p13, 1, 0 }
  0x15   : > { %p562_p2 = pneg %p836_p13  ;;  %s132_s28 = sshll.u32 %s749_s27, 4  ;;  %s133_s28 = int_to_ptr.vmem [resolvable:$true] %s132_s28 }
  0x16   : > { %p575_p4 = scmp.lt.s32.totalorder %s747_s15, 2  ;;  %p1040_p0 = scmp.eq.s32.totalorder %s797_s16, 0 }
  0x17   : > { %s146_s30 = sand.u32 1, %s743_s14   ;;  %s619_s8 = scalar_lea.hbm %s1027_s1, 96 }
  0x18   : > { %p846_p7 = pnand %p562_p2, %p1040_p0  ;;  %p853_p3 = pnand %p575_p4, %p815_p5 }
  0x19   : > { %s550_s5 = smul.u32 48, %s146_s30  ;;  %p620_p8 = scmp.ne.s32.totalorder %s1027_s1, %s619_s8 }
  0x1a   : > { %s1042_s4 = scalar_select %p853_p3, 1, 0 }
  0x1b   : > { %p621_p9 = pneg %p846_p7  ;;  %p626_p4 = scmp.lt.u32.totalorder %s619_s8, %s1027_s1 }
  0x1d   : > { %p622_p10 = pnand %p621_p9, %p620_p8 }
  0x1f   : > { %p623_p2 = pneg %p622_p10 }
  0x21   : > { %p628_p5 = pnand %p626_p4, %p623_p2 }
  0x23   : > { %631 = shalt.err (!%p628_p5)
}
  0x24   : > { %s632_s19 = scalar_lea.vmem %s133_s28, 96  ;;  %p640_p11 = scmp.lt.s32.totalorder %s133_s28, %s133_s28 }
  0x25   : > { %p633_p0 = scmp.ne.s32.totalorder %s133_s28, %s632_s19  ;;  %p641_p6 = scmp.lt.s32.totalorder %s632_s19, %s632_s19 }
  0x27   : > { %p635_p1 = pnand %p633_p0, %p621_p9  ;;  %p642_p13 = por %p641_p6, %p640_p11 }
  0x29   : > { %p636_p12 = pneg %p635_p1 }
  0x2b   : > { %p643_p3 = pnand %p642_p13, %p636_p12 }
  0x2d   : > { %646 = shalt.err (!%p643_p3)
}
  0x2e   : > { %565 = dma.hbm_to_vmem [thread:$0]  (!%p846_p7), %s1027_s1, 96, %s133_s28, [#allocation6]  }
  0x2f   : > { %s551_s27 = smul.u32 768, %s747_s15  ;;  %s150_s6 = scalar_lea.vmem [#allocation2], %s550_s5 }
  0x30   : > { %s158_s7 = sshll.u32 %s150_s6, 4  ;;  %s881_s29 = scalar_lea.sflag [#allocation3], %s146_s30  ;;  %s874_s7 = int_to_ptr.vmem [resolvable:$true] %s158_s7 }
  0x31   : > { %s879_s10 = scalar_lea.hbm %s1026_s0, %s551_s27  ;;  %p1043_p11 = scmp.ne.s32.totalorder %s1042_s4, 0 }
  0x32   : > { %s647_s11 = scalar_lea.hbm %s879_s10, 768  ;;  %s652_s17 = scalar_lea.hbm %s1026_s0, 1536 }
  0x33   : > { %p648_p6 = scmp.ne.s32.totalorder %s879_s10, %s647_s11  ;;  %p649_p12 = pneg %p1043_p11 }
  0x34   : > { %p653_p7 = scmp.lt.u32.totalorder %s879_s10, %s1026_s0  ;;  %p654_p3 = scmp.lt.u32.totalorder %s652_s17, %s647_s11 }
  0x35   : > { %p650_p13 = pnand %p649_p12, %p648_p6  ;;  %p656_p9 = scmp.lt.u32.totalorder %s647_s11, %s879_s10 }
  0x36   : > { %p655_p8 = por %p654_p3, %p653_p7 }
  0x37   : > { %p651_p1 = pneg %p650_p13 }
  0x38   : > { %p657_p10 = por %p656_p9, %p655_p8 }
  0x3a   : > { %p658_p2 = pnand %p657_p10, %p651_p1 }
  0x3c   : > { %661 = shalt.err (!%p658_p2)
}
  0x3d   : > { %s662_s30 = scalar_lea.vmem %s874_s7, 768  ;;  %s750_s22 = smov [#allocation2]  }
  0x3e   : > { %p663_p4 = scmp.ne.s32.totalorder %s874_s7, %s662_s30  ;;  %s667_s27 = sshll.u32 %s750_s22, 4  ;;  %s668_s27 = int_to_ptr.vmem [resolvable:$false] %s667_s27 }
  0x3f   : > { %s669_s6 = scalar_lea.vmem %s668_s27, 1536  ;;  %p670_p6 = scmp.lt.s32.totalorder %s874_s7, %s668_s27 }
  0x40   : > { %p665_p5 = pnand %p663_p4, %p649_p12  ;;  %p671_p13 = scmp.lt.s32.totalorder %s669_s6, %s662_s30 }
  0x42   : > { %p666_p0 = pneg %p665_p5  ;;  %p672_p7 = por %p671_p13, %p670_p6 }
  0x44   : > { %p673_p3 = pnand %p672_p7, %p666_p0 }
  0x46   : > { %676 = shalt.err (!%p673_p3)
}
  0x47   : > { %s751_s8 = smov 384   ;;  %s752_s9 = smov 24  }
  0x48   : > { %569 = dma.hbm_to_vmem [thread:$0]  (!%p1043_p11), %s879_s10, 768, %s874_s7, %s881_s29, %s751_s8, %s751_s8, %s752_s9  }
  0x49   : > { %p1044_p12 = scmp.ne.s32.totalorder %s1039_s26, 0 }
  0x4a   : > { %s912_s11 = sand.u32 (!%p1044_p12), 1, %s739_s13   ;;  %p1045_p1 = scmp.ne.s32.totalorder (!%p1044_p12), %s1036_s23, 0 }
  0x4b   : > { %170 = sbr.rel (%p1044_p12) target bundleno = 443 (0x1bb), region = 32  ;;  %s173_s5 = scalar_lea.sflag (!%p1044_p12), [#allocation3], %s912_s11 }
  0x4c   : > { %s552_s28 = smul.u32 (!%p1044_p12), 48, %s912_s11 }
  0x4e   : > { %s176_s17 = scalar_lea.vmem (!%p1044_p12), [#allocation2], %s552_s28 }
  0x52   : > { %722 = dma.done.wait (%p1045_p1), %s173_s5, 768  }
  0x53   : > { %724 = vsyncadd (%p1045_p1), %s173_s5, 4294966528  ;;  %p1046_p11 = scmp.eq.s32.totalorder %s797_s16, 0 }
  0x55   : > { %726 = dma.done.wait (%p1046_p11), [#allocation6], 96   ;;  %p1047_p8 = pmov %p1046_p11 }
  0x56   : > { %v205_v0 = vld [vmem:[%s176_s17] sm:$0xff]  ;;  %v206_v1 = vld [vmem:[%s176_s17 + $0x8] sm:$0xff]  ;;  %v208_v5 = vld [vmem:[%s176_s17 + $0x18] sm:$0xff]  ;;  %s553_s4 = smul.u32 768, %s797_s16  ;;  %s202_s7 = scalar_lea.vmem [#allocation7], %s552_s28 }
  0x57   : > { %728 = vsyncadd (%p1047_p8), [#allocation6], 4294967200  ;;  %v211_v2 = vunpack.c.l.bf16 %v205_v0  ;;  %v212_v3 = vunpack.c.h.bf16 %v205_v0  ;;  %v213_v4 = vunpack.c.l.bf16 %v206_v1  ;;  %v209_v6 = vld [vmem:[%s176_s17 + $0x20] sm:$0xff]  ;;  %v207_v7 = vld [vmem:[%s176_s17 + $0x10] sm:$0xff]  ;;  %v217_v8 = vunpack.c.l.bf16 %v208_v5  ;;  %s441_s10 = sshll.u32 %s202_s7, 4  ;;  %s427_s20 = scalar_lea.sflag [#allocation4], %s912_s11  ;;  %s982_s10 = int_to_ptr.vmem [resolvable:$true] %s441_s10 }
  0x58   : > { %v218_v9 = vunpack.c.h.bf16 %v208_v5  ;;  %v214_v10 = vunpack.c.h.bf16 %v206_v1  ;;  %v210_v12 = vld [vmem:[%s176_s17 + $0x28] sm:$0xff]  ;;  %v219_v13 = vunpack.c.l.bf16 %v209_v6  ;;  %v220_v14 = vunpack.c.h.bf16 %v209_v6  ;;  %s980_s19 = scalar_lea.hbm %s1029_s3, %s553_s4  ;;  %s677_s30 = scalar_lea.vmem %s982_s10, 768 }
  0x59   : > { %v225_v11 = vadd.f32 %v212_v3, %v211_v2  ;;  %v215_v16 = vunpack.c.l.bf16 %v207_v7  ;;  %v221_v18 = vunpack.c.l.bf16 %v210_v12  ;;  %v216_v20 = vunpack.c.h.bf16 %v207_v7  ;;  %p678_p9 = scmp.ne.s32.totalorder %s982_s10, %s677_s30  ;;  %p1048_p10 = scmp.ne.s32.totalorder %s1037_s24, 0 }
  0x5a   : > { %v232_v15 = vadd.f32 %v218_v9, %v217_v8  ;;  %v222_v24 = vunpack.c.h.bf16 %v210_v12  ;;  %s753_s22 = smov [#allocation7]  }
  0x5b   : > { %v226_v17 = vadd.f32 %v225_v11, %v213_v4  ;;  %p679_p2 = pnand %p678_p9, %p1048_p10  ;;  %s681_s27 = sshll.u32 %s753_s22, 4  ;;  %s682_s27 = int_to_ptr.vmem [resolvable:$false] %s681_s27 }
  0x5c   : > { %v233_v19 = vadd.f32 %v232_v15, %v219_v13  ;;  %s683_s6 = scalar_lea.vmem %s682_s27, 1536  ;;  %p684_p5 = scmp.lt.s32.totalorder %s982_s10, %s682_s27 }
  0x5d   : > { %v227_v21 = vadd.f32 %v226_v17, %v214_v10  ;;  %v224_v17 = vld [vmem:[%s1028_s2] sm:$0x3f]  ;;  %p680_p4 = pneg %p679_p2  ;;  %p685_p0 = scmp.lt.s32.totalorder %s683_s6, %s677_s30 }
  0x5e   : > { %v234_v22 = vadd.f32 %v233_v19, %v220_v14 }
  0x5f   : > { %v228_v23 = vadd.f32 %v227_v21, %v215_v16  ;;  %p686_p6 = por %p685_p0, %p684_p5 }
  0x60   : > { %v235_v25 = vadd.f32 %v234_v22, %v221_v18 }
  0x61   : > { %v229_v26 = vadd.f32 %v228_v23, %v216_v20  ;;  %p687_p13 = pnand %p686_p6, %p680_p4 }
  0x62   : > { %v236_v27 = vadd.f32 %v235_v25, %v222_v24 }
  0x63   : > { %230 = vadd.xlane.f32.xlu0 %v229_v26 }
  0x67   : > { %237 = vadd.xlane.f32.xlu0 %v236_v27 }
  0xf0   : > { %v231_v28 = vpop.xlane.xlu0 %230 }
  0xf1   : > { %v240_v29 = vmul.f32 0.0013020834, %v231_v28 }
  0xf3   : > { %v926_v30 = vsub.f32 %v211_v2, %v240_v29  ;;  %v928_v31 = vsub.f32 %v212_v3, %v240_v29  ;;  %v930_v32 = vsub.f32 %v213_v4, %v240_v29  ;;  %v932_v34 = vsub.f32 %v214_v10, %v240_v29 }
  0xf4   : > { %v238_v33 = vpop.xlane.xlu0 %237  ;;  %v246_v38 = vsub.f32 %v215_v16, %v240_v29  ;;  %v247_v44 = vsub.f32 %v216_v20, %v240_v29  ;;  %v299_v4 = vlaneseq }
  0xf5   : > { %v241_v35 = vmul.f32 0.0013020834, %v238_v33  ;;  %v254_v36 = vmul.f32 %v926_v30, %v926_v30  ;;  %v255_v37 = vmul.f32 %v928_v31, %v928_v31  ;;  %v256_v39 = vmul.f32 %v930_v32, %v930_v32 }
  0xf6   : > { %v257_v45 = vmul.f32 %v932_v34, %v932_v34  ;;  %v258_v50 = vmul.f32 %v246_v38, %v246_v38  ;;  %v259_v55 = vmul.f32 %v247_v44, %v247_v44 }
  0xf7   : > { %v266_v40 = vadd.f32 %v255_v37, %v254_v36  ;;  %v940_v41 = vsub.f32 %v217_v8, %v241_v35  ;;  %v942_v42 = vsub.f32 %v218_v9, %v241_v35  ;;  %v944_v43 = vsub.f32 %v219_v13, %v241_v35 }
  0xf8   : > { %v948_v47 = vsub.f32 %v220_v14, %v241_v35  ;;  %v954_v52 = vsub.f32 %v221_v18, %v241_v35  ;;  %v253_v57 = vsub.f32 %v222_v24, %v241_v35  ;;  %v300_v8 = vshrl.u32 %v299_v4, 7  ;;  %v223_v14 = vld [vmem:[#allocation5] sm:$0x3f] }
  0xf9   : > { %v267_v46 = vadd.f32 %v266_v40, %v256_v39  ;;  %v260_v48 = vmul.f32 %v940_v41, %v940_v41  ;;  %v261_v49 = vmul.f32 %v942_v42, %v942_v42  ;;  %v262_v53 = vmul.f32 %v944_v43, %v944_v43 }
  0xfa   : > { %v263_v58 = vmul.f32 %v948_v47, %v948_v47  ;;  %v264_v61 = vmul.f32 %v954_v52, %v954_v52  ;;  %v265_v63 = vmul.f32 %v253_v57, %v253_v57  ;;  %v301_v10 = vsub.s32 0, %v300_v8 }
  0xfb   : > { %v268_v51 = vadd.f32 %v267_v46, %v257_v45  ;;  %v273_v54 = vadd.f32 %v261_v49, %v260_v48  ;;  %v305_v11 = vsub.s32 1, %v300_v8  ;;  %v309_v12 = vsub.s32 2, %v300_v8 }
  0xfc   : > { %v313_v13 = vsub.s32 3, %v300_v8  ;;  %v317_v15 = vsub.s32 4, %v300_v8  ;;  %v321_v16 = vsub.s32 5, %v300_v8  ;;  %v302_v18 = vrot.slane %v223_v14, %v301_v10 }
  0xfd   : > { %v269_v56 = vadd.f32 %v268_v51, %v258_v50  ;;  %v274_v59 = vadd.f32 %v273_v54, %v262_v53  ;;  %v306_v19 = vrot.slane %v223_v14, %v305_v11  ;;  %v310_v20 = vrot.slane %v223_v14, %v309_v12 }
  0xfe   : > { %v314_v21 = vrot.slane %v223_v14, %v313_v13  ;;  %v318_v23 = vrot.slane %v223_v14, %v317_v15  ;;  %v322_v24 = vrot.slane %v223_v14, %v321_v16  ;;  %v345_v25 = vrot.slane %v224_v17, %v301_v10 }
  0xff   : > { %v270_v60 = vadd.f32 %v269_v56, %v259_v55  ;;  %v275_v62 = vadd.f32 %v274_v59, %v263_v58  ;;  %v349_v26 = vrot.slane %v224_v17, %v305_v11  ;;  %v353_v37 = vrot.slane %v224_v17, %v309_v12 }
 0x100   : > { %v357_v39 = vrot.slane %v224_v17, %v313_v13  ;;  %v361_v46 = vrot.slane %v224_v17, %v317_v15  ;;  %v365_v48 = vrot.slane %v224_v17, %v321_v16 }
 0x101   : > { %271 = vadd.xlane.f32.xlu1 %v270_v60  ;;  %v276_v0 = vadd.f32 %v275_v62, %v264_v61 }
 0x103   : > { %v277_v1 = vadd.f32 %v276_v0, %v265_v63 }
 0x105   : > { %278 = vadd.xlane.f32.xlu1 %v277_v1 }
 0x18e   : > { %v272_v2 = vpop.xlane.xlu1 %271 }
 0x18f   : > { %v280_v3 = vmul.f32 0.0013020834, %v272_v2 }
 0x191   : > { %v282_v5 = vadd.f32 1e-12, %v280_v3 }
 0x192   : > { %v279_v6 = vpop.xlane.xlu1 %278 }
 0x193   : > { %615 = vrsqrt.f32 %v282_v5  ;;  %v281_v7 = vmul.f32 0.0013020834, %v279_v6 }
 0x195   : > { %v283_v9 = vadd.f32 1e-12, %v281_v7 }
 0x197   : > { %617 = vrsqrt.f32 %v283_v9 }
 0x19d   : > { %v616_v22 = vpop.eup %615 }
 0x19e   : > { %v286_v27 = vmul.f32 %v616_v22, %v926_v30  ;;  %v287_v28 = vmul.f32 %v616_v22, %v928_v31  ;;  %v288_v29 = vmul.f32 %v616_v22, %v930_v32  ;;  %v289_v33 = vmul.f32 %v616_v22, %v932_v34 }
 0x19f   : > { %v290_v35 = vmul.f32 %v616_v22, %v246_v38  ;;  %v291_v36 = vmul.f32 %v616_v22, %v247_v44 }
 0x1a0   : > { %v329_v40 = vmul.f32 %v302_v18, %v286_v27  ;;  %v330_v45 = vmul.f32 %v306_v19, %v287_v28  ;;  %v331_v50 = vmul.f32 %v310_v20, %v288_v29  ;;  %v332_v51 = vmul.f32 %v314_v21, %v289_v33 }
 0x1a1   : > { %v618_v49 = vpop.eup %617  ;;  %v333_v53 = vmul.f32 %v318_v23, %v290_v35  ;;  %v334_v30 = vmul.f32 %v322_v24, %v291_v36 }
 0x1a2   : > { %v292_v31 = vmul.f32 %v618_v49, %v940_v41  ;;  %v293_v32 = vmul.f32 %v618_v49, %v942_v42  ;;  %v294_v34 = vmul.f32 %v618_v49, %v944_v43  ;;  %v295_v38 = vmul.f32 %v618_v49, %v948_v47 }
 0x1a3   : > { %v296_v44 = vmul.f32 %v618_v49, %v954_v52  ;;  %v297_v54 = vmul.f32 %v618_v49, %v253_v57  ;;  %v372_v55 = vadd.f32 %v345_v25, %v329_v40  ;;  %v373_v56 = vadd.f32 %v349_v26, %v330_v45 }
 0x1a4   : > { %v335_v58 = vmul.f32 %v302_v18, %v292_v31  ;;  %v336_v59 = vmul.f32 %v306_v19, %v293_v32  ;;  %v337_v60 = vmul.f32 %v310_v20, %v294_v34  ;;  %v338_v61 = vmul.f32 %v314_v21, %v295_v38 }
 0x1a5   : > { %v339_v62 = vmul.f32 %v318_v23, %v296_v44  ;;  %v340_v63 = vmul.f32 %v322_v24, %v297_v54  ;;  %v374_v41 = vadd.f32 %v353_v37, %v331_v50  ;;  %v375_v0 = vadd.f32 %v357_v39, %v332_v51 }
 0x1a6   : > { %v376_v42 = vadd.f32 %v361_v46, %v333_v53  ;;  %v377_v1 = vadd.f32 %v365_v48, %v334_v30  ;;  %v378_v43 = vadd.f32 %v345_v25, %v335_v58  ;;  %v379_v2 = vadd.f32 %v349_v26, %v336_v59 }
 0x1a7   : > { %v380_v47 = vadd.f32 %v353_v37, %v337_v60  ;;  %v381_v52 = vadd.f32 %v357_v39, %v338_v61  ;;  %v382_v57 = vadd.f32 %v361_v46, %v339_v62  ;;  %v383_v3 = vadd.f32 %v365_v48, %v340_v63 }
 0x1a8   : > { %v544_v4 = vpack.c.bf16 %v373_v56, %v372_v55  ;;  %v545_v5 = vpack.c.bf16 %v375_v0, %v374_v41  ;;  %v546_v6 = vpack.c.bf16 %v377_v1, %v376_v42  ;;  %v547_v7 = vpack.c.bf16 %v379_v2, %v378_v43 }
 0x1a9   : > { %v548_v8 = vpack.c.bf16 %v381_v52, %v380_v47  ;;  %v549_v9 = vpack.c.bf16 %v383_v3, %v382_v57 }
 0x1aa   : > { %420 = vst [vmem:[%s202_s7] sm:$0xff] %v544_v4  ;;  %421 = vst [vmem:[%s202_s7 + $0x8] sm:$0xff] %v545_v5 }
 0x1ab   : > { %422 = vst [vmem:[%s202_s7 + $0x10] sm:$0xff] %v546_v6  ;;  %423 = vst [vmem:[%s202_s7 + $0x18] sm:$0xff] %v547_v7 }
 0x1ac   : > { %424 = vst [vmem:[%s202_s7 + $0x20] sm:$0xff] %v548_v8  ;;  %425 = vst [vmem:[%s202_s7 + $0x28] sm:$0xff] %v549_v9 }
 0x1ad   : > { %690 = shalt.err (!%p687_p13)
}
 0x1ae   : > { %s691_s8 = scalar_lea.hbm %s980_s19, 768  ;;  %s695_s5 = scalar_lea.hbm %s1029_s3, 1536 }
 0x1af   : > { %p692_p7 = scmp.ne.s32.totalorder %s980_s19, %s691_s8  ;;  %p696_p1 = scmp.lt.u32.totalorder %s980_s19, %s1029_s3 }
 0x1b0   : > { %p697_p11 = scmp.lt.u32.totalorder %s695_s5, %s691_s8  ;;  %p699_p9 = scmp.lt.u32.totalorder %s691_s8, %s980_s19 }
 0x1b1   : > { %p693_p3 = pnand %p692_p7, %p1048_p10 }
 0x1b2   : > { %p698_p8 = por %p697_p11, %p696_p1 }
 0x1b3   : > { %p694_p12 = pneg %p693_p3 }
 0x1b4   : > { %p700_p2 = por %p699_p9, %p698_p8 }
 0x1b6   : > { %p701_p4 = pnand %p700_p2, %p694_p12 }
 0x1b8   : > { %704 = shalt.err (!%p701_p4)
}
 0x1b9   : > { %s754_s26 = smov 384   ;;  %s755_s4 = smov 24  }
 0x1ba   : > { %560 = dma.vmem_to_hbm [thread:$0]  (%p1048_p10), %s982_s10, 768, %s980_s19, %s427_s20, %s754_s26, %s754_s26, %s755_s4  }
 0x1bb PF: > { %s456_s7 = sand.u32 1, %s735_s12   ;;  %p1049_p5 = scmp.ne.s32.totalorder %s1038_s25, 0 }
 0x1bc   : > { %p1050_p0 = scmp.ge.s32.totalorder %s747_s15, 2  ;;  %s457_s16 = scalar_lea.sflag [#allocation4], %s456_s7 }
 0x1be   : > { %p571_p6 = pnand %p1050_p0, %p1049_p5 }
 0x1c0   : > { %730 = dma.done.wait (!%p571_p6), %s457_s16, 768  }
 0x1c1   : > { %732 = vsyncadd (!%p571_p6), %s457_s16, 4294966528  ;;  %p17_p13 = scmp.ge.s32.totalorder %s801_s18, 4   ;;  %s1051_s12 = smov %s739_s13 }
 0x1c2   : > { %s1052_s13 = smov %s743_s14  ;;  %s1053_s14 = smov %s813_s21 }
 0x1c3   : > { %s1054_s15 = smov %s801_s18  ;;  %19 = sbr.rel (!%p17_p13) target bundleno = 6 (0x6), region = 81 }
 0x1ca   :  { %462 = vsyncpa [#allocation3], 1 }
 0x1cb   :  { %464 = vsyncpa [#allocation3 + $0x1], 1 }
 0x1cc   :  { %465 = vsyncpa [#allocation6], 1 }
 0x1cd   :  { %466 = vsyncpa [#allocation4], 1 }
 0x1ce   :  { %468 = vsyncpa [#allocation4 + $0x1], 1 }

</bundles_post_ra>
